<compile_context>
chip_gen: v7x
topology: tpu7x:2x2x1
jax: 0.10.0
libtpu: 0.0.40
codegen_flags: <defaults>
</compile_context>

<pallas_src>
import functools

import jax
import jax.numpy as jnp
from jax.experimental import pallas as pl
from jax.experimental.pallas import tpu as pltpu

LANE = 128                     # lane width; hidden/action dims zero-padded to this
HEAD_ROWS = 8                  # sublane-aligned "header" block of the packed slab
SLAB_ROWS = HEAD_ROWS + LANE   # 136 rows total per packed parameter slab
MAX_TILE_B = 4096              # VMEM safety cap for huge batches (irrelevant here)


def _round_up(n, m):
    return ((n + m - 1) // m) * m


def _num_tensorcores():
    """TensorCores one pallas_call can shard 'parallel' grid axes over (1 or 2)."""
    try:
        dev = jax.local_devices()[0]
        for attr in ("num_cores", "core_count"):
            n = getattr(dev, attr, None)
            if isinstance(n, int) and n > 0:
                return min(n, 2)
        kind = dev.device_kind.lower()
        if any(t in kind for t in ("v4", "v5p", "v7")):
            return 2
    except Exception:
        pass
    return 1


def _dqn_kernel(x_ref, p_ref, o_ref, *, in_states):
    """One (network, batch-tile) grid point of the DQN forward.

    x_ref: [TB, in_states]      raw state features
    p_ref: [SLAB_ROWS, LANE]    packed params:
             rows 0..in_states-1 : w1 rows (lane-padded to LANE)
             row  in_states      : b1      (lane-padded)
             row  in_states + 1  : b2      (lane-padded)
             rows HEAD_ROWS..+127: w2 zero-padded to [LANE, LANE]
    o_ref: [TB, LANE]           Q-values in lanes 0..out_actions-1
    """
    x = x_ref[...]                                   # [TB, in_states]
    head = p_ref[0:HEAD_ROWS, :]                     # [8, LANE]    aligned load
    w2 = p_ref[HEAD_ROWS:SLAB_ROWS, :]               # [LANE, LANE] aligned load

    b1 = head[in_states:in_states + 1, :]            # [1, LANE]
    b2 = head[in_states + 1:in_states + 2, :]        # [1, LANE]

    # Layer 1 on the VPU: K == in_states is tiny, so an unrolled broadcast-FMA
    # avoids MXU weight-push + fill/drain for a [TB, 2] @ [2, 32] matmul.
    h = jnp.broadcast_to(b1, (x.shape[0], LANE))     # [TB, LANE]
    for k in range(in_states):                       # static, unrolled
        h = h + x[:, k:k + 1] * head[k:k + 1, :]
    h = jnp.maximum(h, 0.0)                          # ReLU; padded lanes stay 0

    # Layer 2 on the MXU with a lane-dense [TB, LANE] result.  Lanes >= h1 of
    # h are exactly zero and rows >= h1 of w2 are zero, so no slicing needed.
    y = jnp.dot(h, w2, preferred_element_type=jnp.float32) + b2
    o_ref[...] = y.astype(o_ref.dtype)


def pack_params(w1, b1, w2, b2):
    """Pack (w1[in,h1], b1[h1], w2[h1,out], b2[out]) into one f32 slab.

    Done once per parameter set (outside the per-step hot path) so the kernel
    sees a single DMA-able ref.
    """
    in_states, h1 = w1.shape
    out_actions = w2.shape[1]
    assert in_states <= HEAD_ROWS - 2 and h1 <= LANE and out_actions <= LANE
    head = jnp.zeros((HEAD_ROWS, LANE), jnp.float32)
    head = head.at[:in_states, :h1].set(w1.astype(jnp.float32))
    head = head.at[in_states, :h1].set(b1.astype(jnp.float32))
    head = head.at[in_states + 1, :out_actions].set(b2.astype(jnp.float32))
    w2_full = jnp.zeros((LANE, LANE), jnp.float32)
    w2_full = w2_full.at[:h1, :out_actions].set(w2.astype(jnp.float32))
    return jnp.concatenate([head, w2_full], axis=0)  # [SLAB_ROWS, LANE]


def dqn_forward(x, packed, out_actions, *, block_b=None):
    """Evaluate one (or several) DQNs on a batch of states in one pallas_call.

    x:      [B, in_states] f32 states.
    packed: a single pack_params(...) slab [SLAB_ROWS, LANE], or a stack of N
            slabs [N, SLAB_ROWS, LANE] (e.g. policy + target network) to fuse
            several forwards into one launch.
    Returns [B, out_actions] (single slab) or [N, B, out_actions] (stack).
    """
    single = packed.ndim == 2
    if single:
        packed = packed[None]
    N = packed.shape[0]
    assert packed.shape[1:] == (SLAB_ROWS, LANE)

    B, in_states = x.shape
    Bp8 = _round_up(B, 8)

    if block_b is None:
        # Core-count-aware tiling: just enough 'parallel' grid points to feed
        # every TensorCore (1 tile on v5e/v6e; 2 total on dual-TC chips --
        # either 2 batch tiles or 1 tile x 2 networks), and never more, since
        # the kernel is grid-step-overhead-bound at DQN sizes.
        ncores = _num_tensorcores()
        want_tiles = max(1, -(-ncores // N))
        TB = _round_up(-(-Bp8 // want_tiles), 8)
    else:
        TB = _round_up(min(block_b, Bp8), 8)
    TB = min(TB, MAX_TILE_B)                 # VMEM safety only; no-op here
    num_tiles = pl.cdiv(Bp8, TB)
    Bp = num_tiles * TB
    if Bp != B:
        x = jnp.pad(x, ((0, Bp - B), (0, 0)))

    kernel = functools.partial(_dqn_kernel, in_states=in_states)
    y = pl.pallas_call(
        kernel,
        out_shape=jax.ShapeDtypeStruct((N, Bp, LANE), jnp.float32),
        grid=(N, num_tiles),
        in_specs=[
            # Batch tile of states (shared by every network).
            pl.BlockSpec((TB, in_states), lambda n, i: (i, 0)),
            # This network's packed weight slab.  Constant in the batch axis,
            # so it is DMA'd once per network and stays VMEM-resident; with a
            # 1-2 step grid the second pipeline buffer costs only 68 KiB.
            pl.BlockSpec((None, SLAB_ROWS, LANE), lambda n, i: (n, 0, 0)),
        ],
        # Lane-dense output tile (Q-values in the first out_actions lanes).
        out_specs=pl.BlockSpec((None, TB, LANE), lambda n, i: (n, i, 0)),
        compiler_params=pltpu.CompilerParams(
            dimension_semantics=("parallel", "parallel")),
    )(x, packed)

    y = y[:, :B, :out_actions]
    return y[0] if single else y


def init_params(key, in_states, h1_nodes, out_actions):
    """Deterministic init mimicking nn.Linear's U(-1/sqrt(fan_in), +1/sqrt(fan_in)).
    Weights stored already transposed to [in, out] (kernel does x @ W + b)."""
    k1, k2, k3, k4 = jax.random.split(key, 4)
    bound1 = 1.0 / jnp.sqrt(in_states)
    bound2 = 1.0 / jnp.sqrt(h1_nodes)
    w1 = jax.random.uniform(k1, (in_states, h1_nodes), jnp.float32, -bound1, bound1)
    b1 = jax.random.uniform(k2, (h1_nodes,), jnp.float32, -bound1, bound1)
    w2 = jax.random.uniform(k3, (h1_nodes, out_actions), jnp.float32, -bound2, bound2)
    b2 = jax.random.uniform(k4, (out_actions,), jnp.float32, -bound2, bound2)
    return w1, b1, w2, b2


if __name__ == "__main__":
    # MountainCar-v0 DQN: 2 state dims, 3 actions, hidden = 32.
    # Batch of 256 states (a replay-buffer minibatch) amortizes the launch.
    in_states, h1_nodes, out_actions = 2, 32, 3
    batch = 256

    key = jax.random.PRNGKey(0)
    kx, kp, kt = jax.random.split(key, 3)
    x = jax.random.normal(kx, (batch, in_states), dtype=jnp.float32)
    policy = init_params(kp, in_states, h1_nodes, out_actions)
    target = init_params(kt, in_states, h1_nodes, out_actions)

    def ref_fwd(params, xs):
        w1, b1, w2, b2 = params
        return jnp.maximum(xs @ w1 + b1, 0.0) @ w2 + b2

    # --- single-network forward (== DQN.forward of the PyTorch module) -----
    packed_policy = pack_params(*policy)           # one-time packing per net
    q = jax.block_until_ready(dqn_forward(x, packed_policy, out_actions))
    assert q.shape == (batch, out_actions)
    assert jnp.allclose(q, ref_fwd(policy, x), atol=1e-5, rtol=1e-5)

    # --- fused policy + target evaluation in ONE pallas_call ----------------
    packed_both = jnp.stack([packed_policy, pack_params(*target)])
    q_both = jax.block_until_ready(dqn_forward(x, packed_both, out_actions))
    assert q_both.shape == (2, batch, out_actions)
    assert jnp.allclose(q_both[0], ref_fwd(policy, x), atol=1e-5, rtol=1e-5)
    assert jnp.allclose(q_both[1], ref_fwd(target, x), atol=1e-5, rtol=1e-5)

    print("KERNEL_OK")
</pallas_src>

<mosaic_0001>
module attributes {stable_mosaic.version = 11 : i64} {
  func.func @_dqn_kernel(%arg0: i32, %arg1: i32, %arg2: memref<256x2xf32, #tpu.memory_space<vmem>>, %arg3: memref<1x136x128xf32, #tpu.memory_space<vmem>>, %arg4: memref<1x256x128xf32, #tpu.memory_space<vmem>>) attributes {dimension_semantics = [#tpu.dimension_semantics<parallel>, #tpu.dimension_semantics<parallel>], iteration_bounds = array<i64: 1, 1>, scalar_prefetch = 0 : i64, scratch_operands = 0 : i64, tpu.core_type = #tpu.core_type<tc>, window_params = [{transform_indices = @transform_0, window_bounds = array<i64: 256, 2>}, {transform_indices = @transform_1, window_bounds = array<i64: 1, 136, 128>}, {transform_indices = @transform_2, window_bounds = array<i64: 1, 256, 128>}]} {
    %c0 = arith.constant 0 : index
    %c0_0 = arith.constant 0 : index
    %0 = vector.load %arg2[%c0, %c0_0] : memref<256x2xf32, #tpu.memory_space<vmem>>, vector<256x2xf32>
    %c0_1 = arith.constant 0 : index
    %c0_2 = arith.constant 0 : index
    %c0_3 = arith.constant 0 : index
    %1 = vector.load %arg3[%c0_1, %c0_2, %c0_3] : memref<1x136x128xf32, #tpu.memory_space<vmem>>, vector<1x8x128xf32>
    %2 = vector.shape_cast %1 : vector<1x8x128xf32> to vector<8x128xf32>
    %c0_4 = arith.constant 0 : index
    %c8 = arith.constant 8 : index
    %c0_5 = arith.constant 0 : index
    %3 = vector.load %arg3[%c0_4, %c8, %c0_5] : memref<1x136x128xf32, #tpu.memory_space<vmem>>, vector<1x128x128xf32>
    %4 = vector.shape_cast %3 : vector<1x128x128xf32> to vector<128x128xf32>
    %5 = vector.extract_strided_slice %2 {offsets = [2, 0], sizes = [1, 128], strides = [1, 1]} : vector<8x128xf32> to vector<1x128xf32>
    %6 = vector.extract_strided_slice %2 {offsets = [3, 0], sizes = [1, 128], strides = [1, 1]} : vector<8x128xf32> to vector<1x128xf32>
    %7 = vector.shape_cast %5 : vector<1x128xf32> to vector<1x128xf32>
    %8 = vector.broadcast %7 : vector<1x128xf32> to vector<256x128xf32>
    %9 = vector.extract_strided_slice %0 {offsets = [0, 0], sizes = [256, 1], strides = [1, 1]} : vector<256x2xf32> to vector<256x1xf32>
    %10 = vector.extract_strided_slice %2 {offsets = [0, 0], sizes = [1, 128], strides = [1, 1]} : vector<8x128xf32> to vector<1x128xf32>
    %11 = vector.broadcast %9 : vector<256x1xf32> to vector<256x128xf32>
    %12 = vector.broadcast %10 : vector<1x128xf32> to vector<256x128xf32>
    %13 = arith.mulf %11, %12 : vector<256x128xf32>
    %14 = arith.addf %8, %13 : vector<256x128xf32>
    %15 = vector.extract_strided_slice %0 {offsets = [0, 1], sizes = [256, 1], strides = [1, 1]} : vector<256x2xf32> to vector<256x1xf32>
    %16 = vector.extract_strided_slice %2 {offsets = [1, 0], sizes = [1, 128], strides = [1, 1]} : vector<8x128xf32> to vector<1x128xf32>
    %17 = vector.broadcast %15 : vector<256x1xf32> to vector<256x128xf32>
    %18 = vector.broadcast %16 : vector<1x128xf32> to vector<256x128xf32>
    %19 = arith.mulf %17, %18 : vector<256x128xf32>
    %20 = arith.addf %14, %19 : vector<256x128xf32>
    %cst = arith.constant 0.000000e+00 : f32
    %21 = vector.broadcast %cst : f32 to vector<256x128xf32>
    %22 = arith.maximumf %20, %21 : vector<256x128xf32>
    %cst_6 = arith.constant dense<0.000000e+00> : vector<256x128xf32>
    %23 = tpu.matmul %22, %4, %cst_6 {dimension_numbers = #tpu.dot_dimension_numbers<[1], [0], [0], [1], [0, 0, 1, 1], [], []>} : vector<256x128xf32>, vector<128x128xf32>, vector<256x128xf32> -> vector<256x128xf32>
    %24 = vector.broadcast %6 : vector<1x128xf32> to vector<256x128xf32>
    %25 = arith.addf %23, %24 : vector<256x128xf32>
    %c0_7 = arith.constant 0 : index
    %c0_8 = arith.constant 0 : index
    %c0_9 = arith.constant 0 : index
    %26 = vector.load %arg4[%c0_7, %c0_8, %c0_9] : memref<1x256x128xf32, #tpu.memory_space<vmem>>, vector<1x256x128xf32>
    %27 = vector.shape_cast %26 : vector<1x256x128xf32> to vector<256x128xf32>
    %28 = vector.shape_cast %25 : vector<256x128xf32> to vector<1x256x128xf32>
    tpu.vector_store %arg4[%c0_7, %c0_8, %c0_9], %28 {strides = array<i32>} : memref<1x256x128xf32, #tpu.memory_space<vmem>>, vector<1x256x128xf32>,
    return
  }
  func.func @transform_0(%arg0: i32, %arg1: i32) -> (i32, i32) {
    %c0_i32 = arith.constant 0 : i32
    %c0_i32_0 = arith.constant 0 : i32
    return %arg1, %c0_i32 : i32, i32
  }
  func.func @transform_1(%arg0: i32, %arg1: i32) -> (i32, i32, i32) {
    %c0_i32 = arith.constant 0 : i32
    %c0_i32_0 = arith.constant 0 : i32
    %c0_i32_1 = arith.constant 0 : i32
    return %arg0, %c0_i32, %c0_i32_0 : i32, i32, i32
  }
  func.func @transform_2(%arg0: i32, %arg1: i32) -> (i32, i32, i32) {
    %c0_i32 = arith.constant 0 : i32
    %c0_i32_0 = arith.constant 0 : i32
    return %arg0, %arg1, %c0_i32 : i32, i32, i32
  }
}

</mosaic_0001>

<bundles_post_ra>
// kernel: tpu_custom_call.1
= control target key start
LH: loop header
LB: loop body
LE: loop exit
PB: predicated region body
PF: predicated region fallthrough
CT: control target
= control target key end

     0   :  { %v1021_v2 = vmov 0   ;;  %v1022_v6 = vmov 1   ;;  %s1421_s0 = inlined_call_operand.vmem [shape: f32[256,2], index: 0, kind: input, shape index: {}]   ;;  %s1422_s1 = inlined_call_operand.vmem [shape: f32[1,136,128], index: 1, kind: input, shape index: {}]   ;;  %s1423_s2 = inlined_call_operand.hbm [shape: f32[1,256,128], index: 2, kind: output, shape index: {}]  }
   0x1   :  { %v13_v0 = vld [vmem:[%s1421_s0 + $0x8] sm:$0xff]  ;;  %v1047_v1 = vld [vmem:[%s1421_s0] sm:$0xff]  ;;  %980 = vset.pattern.permute.xlu1 %v1021_v2  ;;  %979 = vset.pattern.permute.xlu0 %v1021_v2  ;;  %v1064_v5 = vld [vmem:[%s1421_s0 + $0x90] sm:$0xff] }
   0x2   :  { %72 = vperm.xlu1 %980, %v13_v0   ;;  %67 = vperm.xlu0 %979, %v1047_v1   ;;  %v1055_v3 = vld [vmem:[%s1421_s0 + $0x88] sm:$0xff]  ;;  %v28_v4 = vld [vmem:[%s1421_s0 + $0x80] sm:$0xff] }
   0x6   :  { %152 = vperm.xlu1 %980, %v1055_v3   ;;  %147 = vperm.xlu0 %979, %v28_v4  }
   0xa   :  { %981 = vset.pattern.permute.xlu1 %v1022_v6  ;;  %157 = vperm.xlu0 %979, %v1064_v5  }
   0xb   :  { %7 = vsyncpa [#allocation3], 0  ;;  %358 = vperm.xlu1 %981, %v28_v4   ;;  %v1071_v7 = vld [vmem:[%s1421_s0 + $0xa0] sm:$0xff]  ;;  %v45_v8 = vld [vmem:[%s1422_s1 + $0x8] sm:$0xff]  ;;  %v61_v56 = vlaneseq }
   0xc   :  { %v46_v9 = vld [vmem:[%s1422_s1 + $0x10] sm:$0xff]  ;;  %v47_v12 = vld [vmem:[%s1422_s1 + $0x18] sm:$0xff]  ;;  %v48_v13 = vld [vmem:[%s1422_s1 + $0x20] sm:$0xff] }
   0xd   :  { %v926_v10 = vpack.c.bf16 %v46_v9, %v45_v8  ;;  %v1083_v11 = vld [vmem:[%s1421_s0 + $0xb0] sm:$0xff]  ;;  %v930_v14 = vpack.c.bf16 %v48_v13, %v47_v12  ;;  %v1101_v16 = vld [vmem:[%s1421_s0 + $0xc0] sm:$0xff]  ;;  %v49_v17 = vld [vmem:[%s1422_s1 + $0x28] sm:$0xff]  ;;  %v1231_v57 = vshrl.u32 %v61_v56, 7 }
   0xe   :  { %167 = vperm.xlu0 %979, %v1071_v7   ;;  %v1094_v15 = vld [vmem:[%s1421_s0 + $0x10] sm:$0xff]  ;;  %v15_v20 = vld [vmem:[%s1421_s0 + $0x18] sm:$0xff]  ;;  %v52_v23 = vld [vmem:[%s1422_s1 + $0x40] sm:$0xff] }
   0xf   :  { %927 = vmatprep.subr.bf16.mxu0 %v926_v10  ;;  %298 = vperm.xlu1 %981, %v13_v0   ;;  %v50_v18 = vld [vmem:[%s1422_s1 + $0x30] sm:$0xff]  ;;  %v51_v22 = vld [vmem:[%s1422_s1 + $0x38] sm:$0xff]  ;;  %v1132_v26 = vld [vmem:[%s1421_s0 + $0xe0] sm:$0xff]  ;;  %v227_v58 = vsub.s32 0, %v1231_v57  ;;  %v63_v62 = vsub.s32 2, %v1231_v57  ;;  %v423_v0 = vsub.s32 1, %v1231_v57 }
  0x10   :  { %929 = vmatpush3.bf16.msra.mxu0 %v926_v10  ;;  %958 = vmatprep.subr.bf16.mxu1 %v926_v10  ;;  %v934_v19 = vpack.c.bf16 %v50_v18, %v49_v17  ;;  %v1117_v21 = vld [vmem:[%s1421_s0 + $0xd0] sm:$0xff]  ;;  %v938_v24 = vpack.c.bf16 %v52_v23, %v51_v22  ;;  %v31_v25 = vld [vmem:[%s1421_s0 + $0x98] sm:$0xff]  ;;  %v53_v27 = vld [vmem:[%s1422_s1 + $0x48] sm:$0xff] }
  0x11   :  { %966 = vmatpush3.bf16.msra.mxu1 %v926_v10  ;;  %931 = vmatprep.subr.bf16.mxu0 %v930_v14  ;;  %v54_v28 = vld [vmem:[%s1422_s1 + $0x50] sm:$0xff]  ;;  %v55_v31 = vld [vmem:[%s1422_s1 + $0x58] sm:$0xff]  ;;  %v56_v32 = vld [vmem:[%s1422_s1 + $0x60] sm:$0xff] }
  0x12   :  { %177 = vperm.xlu0 %979, %v1083_v11   ;;  %959 = vmatprep.subr.bf16.mxu1 %v930_v14  ;;  %v942_v29 = vpack.c.bf16 %v54_v28, %v53_v27  ;;  %v1144_v30 = vld [vmem:[%s1421_s0 + $0xf0] sm:$0xff]  ;;  %v946_v33 = vpack.c.bf16 %v56_v32, %v55_v31  ;;  %v57_v34 = vld [vmem:[%s1422_s1 + $0x68] sm:$0xff]  ;;  %v16_v37 = vld [vmem:[%s1421_s0 + $0x20] sm:$0xff] }
  0x13   :  { %982 = vset.pattern.permute.xlu1 %v1021_v2  ;;  %v58_v35 = vld [vmem:[%s1422_s1 + $0x70] sm:$0xff]  ;;  %v59_v38 = vld [vmem:[%s1422_s1 + $0x78] sm:$0xff]  ;;  %v60_v39 = vld [vmem:[%s1422_s1 + $0x80] sm:$0xff] }
  0x14   :  { %933 = vmatpush3.bf16.msra.mxu0 %v930_v14  ;;  %77 = vperm.xlu1 %982, %v1094_v15   ;;  %v950_v36 = vpack.c.bf16 %v58_v35, %v57_v34  ;;  %v954_v40 = vpack.c.bf16 %v60_v39, %v59_v38  ;;  %v17_v41 = vld [vmem:[%s1421_s0 + $0x28] sm:$0xff]  ;;  %v18_v43 = vld [vmem:[%s1421_s0 + $0x30] sm:$0xff]  ;;  %v19_v44 = vld [vmem:[%s1421_s0 + $0x38] sm:$0xff] }
  0x15   :  { %967 = vmatpush3.bf16.msra.mxu1 %v930_v14  ;;  %935 = vmatprep.subr.bf16.mxu0 %v934_v19  ;;  %v33_v42 = vld [vmem:[%s1421_s0 + $0xa8] sm:$0xff]  ;;  %v35_v45 = vld [vmem:[%s1421_s0 + $0xb8] sm:$0xff]  ;;  %v20_v46 = vld [vmem:[%s1421_s0 + $0x40] sm:$0xff] }
  0x16   :  { %187 = vperm.xlu0 %979, %v1101_v16   ;;  %960 = vmatprep.subr.bf16.mxu1 %v934_v19  ;;  %v37_v47 = vld [vmem:[%s1421_s0 + $0xc8] sm:$0xff]  ;;  %v22_v48 = vld [vmem:[%s1421_s0 + $0x50] sm:$0xff]  ;;  %v39_v49 = vld [vmem:[%s1421_s0 + $0xd8] sm:$0xff] }
  0x17   :  { %v24_v50 = vld [vmem:[%s1421_s0 + $0x60] sm:$0xff]  ;;  %v21_v51 = vld [vmem:[%s1421_s0 + $0x48] sm:$0xff]  ;;  %v26_v53 = vld [vmem:[%s1421_s0 + $0x70] sm:$0xff] }
  0x18   :  { %937 = vmatpush3.bf16.msra.mxu0 %v934_v19  ;;  %82 = vperm.xlu1 %982, %v15_v20   ;;  %v41_v52 = vld [vmem:[%s1421_s0 + $0xe8] sm:$0xff]  ;;  %v43_v54 = vld [vmem:[%s1421_s0 + $0xf8] sm:$0xff]  ;;  %v1238_v59 = vld [vmem:[%s1422_s1] sm:$0xff] }
  0x19   :  { %968 = vmatpush3.bf16.msra.mxu1 %v934_v19  ;;  %939 = vmatprep.subr.bf16.mxu0 %v938_v24  ;;  %v23_v55 = vld [vmem:[%s1421_s0 + $0x58] sm:$0xff]  ;;  %v25_v63 = vld [vmem:[%s1421_s0 + $0x68] sm:$0xff]  ;;  %v1253_v8 = vrot.slane %v1238_v59, %v423_v0 }
  0x1a   :  { %197 = vperm.xlu0 %979, %v1117_v21   ;;  %961 = vmatprep.subr.bf16.mxu1 %v938_v24  ;;  %v27_v22 = vld [vmem:[%s1421_s0 + $0x78] sm:$0xff]  ;;  %s1023_s0 = smov [#allocation2]  }
  0x1b   :  { %s787_s22 = sshll.u32 %s1023_s0, 4  ;;  %s788_s22 = int_to_ptr.vmem [resolvable:$true] %s787_s22 }
  0x1c   :  { %941 = vmatpush3.bf16.msra.mxu0 %v938_v24  ;;  %162 = vperm.xlu1 %982, %v31_v25   ;;  %s997_s23 = scalar_lea.vmem %s788_s22, 4096  ;;  %p1002_p1 = scmp.lt.s32.totalorder %s788_s22, %s788_s22 }
  0x1d   :  { %969 = vmatpush3.bf16.msra.mxu1 %v938_v24  ;;  %943 = vmatprep.subr.bf16.mxu0 %v942_v29  ;;  %p998_p0 = scmp.ne.s32.totalorder %s788_s22, %s997_s23  ;;  %p1003_p2 = scmp.lt.s32.totalorder %s997_s23, %s997_s23 }
  0x1e   :  { %207 = vperm.xlu0 %979, %v1132_v26   ;;  %962 = vmatprep.subr.bf16.mxu1 %v942_v29 }
  0x1f   :  { %p1004_p3 = por %p1003_p2, %p1002_p1 }
  0x20   :  { %945 = vmatpush3.bf16.msra.mxu0 %v942_v29  ;;  %983 = vset.pattern.permute.xlu1 %v1022_v6 }
  0x21   :  { %366 = vperm.xlu1 %983, %v1064_v5   ;;  %970 = vmatpush3.bf16.msra.mxu1 %v942_v29  ;;  %p1005_p4 = pnand %p1004_p3, %p998_p0 }
  0x22   :  { %217 = vperm.xlu0 %979, %v1144_v30   ;;  %947 = vmatprep.subr.bf16.mxu0 %v946_v33 }
  0x23   :  { %963 = vmatprep.subr.bf16.mxu1 %v946_v33 }
  0x24   :  { %949 = vmatpush3.bf16.msra.mxu0 %v946_v33 }
  0x25   :  { %306 = vperm.xlu1 %983, %v15_v20   ;;  %971 = vmatpush3.bf16.msra.mxu1 %v946_v33 }
  0x26   :  { %995 = vset.pattern.permute.xlu0 %v1022_v6  ;;  %951 = vmatprep.subr.bf16.mxu0 %v950_v36 }
  0x27   :  { %294 = vperm.xlu0 %995, %v1047_v1   ;;  %964 = vmatprep.subr.bf16.mxu1 %v950_v36  ;;  %v1246_v1 = vrot.slane %v1238_v59, %v227_v58 }
  0x28   :  { %953 = vmatpush3.bf16.msra.mxu0 %v950_v36 }
  0x29   :  { %984 = vset.pattern.permute.xlu1 %v1021_v2  ;;  %972 = vmatpush3.bf16.msra.mxu1 %v950_v36 }
  0x2a   :  { %87 = vperm.xlu1 %984, %v16_v37   ;;  %955 = vmatprep.subr.bf16.mxu0 %v954_v40 }
  0x2b   :  { %362 = vperm.xlu0 %995, %v1055_v3   ;;  %965 = vmatprep.subr.bf16.mxu1 %v954_v40 }
  0x2c   :  { %957 = vmatpush3.bf16.msra.mxu0 %v954_v40 }
  0x2d   :  { %973 = vmatpush3.bf16.msra.mxu1 %v954_v40 }
  0x2e   :  { %92 = vperm.xlu1 %984, %v17_v41  }
  0x2f   :  { %302 = vperm.xlu0 %995, %v1094_v15  }
  0x32   :  { %172 = vperm.xlu1 %984, %v33_v42  }
  0x33   :  { %370 = vperm.xlu0 %995, %v31_v25  }
  0x36   :  { %985 = vset.pattern.permute.xlu1 %v1022_v6 }
  0x37   :  { %374 = vperm.xlu1 %985, %v1071_v7   ;;  %310 = vperm.xlu0 %995, %v16_v37   ;;  %v1250_v7 = vrot.slane %v1238_v59, %v63_v62 }
  0x3b   :  { %314 = vperm.xlu1 %985, %v17_v41   ;;  %378 = vperm.xlu0 %995, %v33_v42  }
  0x3f   :  { %986 = vset.pattern.permute.xlu1 %v1021_v2  ;;  %318 = vperm.xlu0 %995, %v18_v43  }
  0x40   :  { %97 = vperm.xlu1 %986, %v18_v43  }
  0x43   :  { %386 = vperm.xlu0 %995, %v35_v45  }
  0x44   :  { %102 = vperm.xlu1 %986, %v19_v44  }
  0x47   :  { %326 = vperm.xlu0 %995, %v20_v46  }
  0x48   :  { %182 = vperm.xlu1 %986, %v35_v45  }
  0x4b   :  { %394 = vperm.xlu0 %995, %v37_v47  }
  0x4c   :  { %987 = vset.pattern.permute.xlu1 %v1022_v6 }
  0x4d   :  { %382 = vperm.xlu1 %987, %v1083_v11  }
  0x4f   :  { %334 = vperm.xlu0 %995, %v22_v48  }
  0x51   :  { %322 = vperm.xlu1 %987, %v19_v44  }
  0x53   :  { %402 = vperm.xlu0 %995, %v39_v49  }
  0x55   :  { %988 = vset.pattern.permute.xlu1 %v1021_v2 }
  0x56   :  { %107 = vperm.xlu1 %988, %v20_v46  }
  0x57   :  { %342 = vperm.xlu0 %995, %v24_v50  }
  0x5a   :  { %112 = vperm.xlu1 %988, %v21_v51  }
  0x5b   :  { %410 = vperm.xlu0 %995, %v41_v52  }
  0x5e   :  { %192 = vperm.xlu1 %988, %v37_v47  }
  0x5f   :  { %350 = vperm.xlu0 %995, %v26_v53  }
  0x62   :  { %989 = vset.pattern.permute.xlu1 %v1022_v6 }
  0x63   :  { %390 = vperm.xlu1 %989, %v1101_v16   ;;  %418 = vperm.xlu0 %995, %v43_v54  }
  0x67   :  { %330 = vperm.xlu1 %989, %v21_v51  }
  0x6b   :  { %990 = vset.pattern.permute.xlu1 %v1021_v2 }
  0x6c   :  { %117 = vperm.xlu1 %990, %v22_v48  }
  0x70   :  { %122 = vperm.xlu1 %990, %v23_v55  }
  0x74   :  { %202 = vperm.xlu1 %990, %v39_v49  }
  0x78   :  { %991 = vset.pattern.permute.xlu1 %v1022_v6 }
  0x79   :  { %398 = vperm.xlu1 %991, %v1117_v21  }
  0x7d   :  { %338 = vperm.xlu1 %991, %v23_v55  }
  0x81   :  { %992 = vset.pattern.permute.xlu1 %v1021_v2  ;;  %v73_v60 = vpop.permute.xlu1 %72  ;;  %v68_v61 = vpop.permute.xlu0 %67 }
  0x82   :  { %127 = vperm.xlu1 %992, %v24_v50  }
  0x85   :  { %v153_v3 = vpop.permute.xlu1 %152  ;;  %v148_v4 = vpop.permute.xlu0 %147 }
  0x86   :  { %132 = vperm.xlu1 %992, %v25_v63   ;;  %v245_v5 = vmul.f32 %v1246_v1, %v148_v4  ;;  %v246_v35 = vmul.f32 %v1246_v1, %v153_v3 }
  0x88   :  { %v277_v10 = vadd.f32 %v245_v5, %v1250_v7  ;;  %v278_v42 = vadd.f32 %v246_v35, %v1250_v7 }
  0x89   :  { %v158_v9 = vpop.permute.xlu0 %157 }
  0x8a   :  { %212 = vperm.xlu1 %992, %v41_v52   ;;  %v359_v11 = vpop.permute.xlu1 %358  ;;  %v247_v28 = vmul.f32 %v1246_v1, %v158_v9 }
  0x8b   :  { %v441_v12 = vmul.f32 %v1253_v8, %v359_v11 }
  0x8c   :  { %v279_v37 = vadd.f32 %v247_v28, %v1250_v7 }
  0x8d   :  { %v168_v13 = vpop.permute.xlu0 %167  ;;  %v473_v14 = vadd.f32 %v441_v12, %v277_v10 }
  0x8e   :  { %993 = vset.pattern.permute.xlu1 %v1022_v6  ;;  %v299_v15 = vpop.permute.xlu1 %298 }
  0x8f   :  { %406 = vperm.xlu1 %993, %v1132_v26   ;;  %v505_v16 = vmax.f32 %v473_v14, 0.0  ;;  %v229_v26 = vmul.f32 %v1246_v1, %v68_v61  ;;  %v426_v29 = vmul.f32 %v1253_v8, %v299_v15  ;;  %v249_v61 = vmul.f32 %v1246_v1, %v168_v13 }
  0x91   :  { %902 = vmatprep.mubr.f32.mxu1 %v505_v16  ;;  %v1259_v17 = vpop.permute.xlu0 %177  ;;  %v261_v32 = vadd.f32 %v229_v26, %v1250_v7  ;;  %v281_v11 = vadd.f32 %v249_v61, %v1250_v7 }
  0x93   :  { %346 = vperm.xlu1 %993, %v25_v63   ;;  %v78_v18 = vpop.permute.xlu1 %77 }
  0x94   :  { %v231_v43 = vmul.f32 %v1246_v1, %v78_v18 }
  0x95   :  { %v1261_v19 = vpop.permute.xlu0 %187 }
  0x97   :  { %994 = vset.pattern.permute.xlu1 %v1021_v2  ;;  %v83_v20 = vpop.permute.xlu1 %82  ;;  %v230_v2 = vmul.f32 %v1246_v1, %v73_v60 }
  0x98   :  { %137 = vperm.xlu1 %994, %v26_v53   ;;  %v232_v41 = vmul.f32 %v1246_v1, %v83_v20  ;;  %v263_v53 = vadd.f32 %v231_v43, %v1250_v7 }
  0x99   :  { %v1264_v21 = vpop.permute.xlu0 %197  ;;  %v262_v33 = vadd.f32 %v230_v2, %v1250_v7 }
  0x9a   :  { %v264_v51 = vadd.f32 %v232_v41, %v1250_v7 }
  0x9b   :  { %v163_v23 = vpop.permute.xlu1 %162  ;;  %v458_v38 = vadd.f32 %v426_v29, %v262_v33 }
  0x9c   :  { %142 = vperm.xlu1 %994, %v27_v22  }
  0x9d   :  { %v1269_v24 = vpop.permute.xlu0 %207  ;;  %v490_v46 = vmax.f32 %v458_v38, 0.0 }
  0xa0   :  { %222 = vperm.xlu1 %994, %v43_v54   ;;  %v367_v25 = vpop.permute.xlu1 %366  ;;  %v248_v54 = vmul.f32 %v1246_v1, %v163_v23 }
  0xa1   :  { %v1272_v27 = vpop.permute.xlu0 %217  ;;  %v443_v39 = vmul.f32 %v1253_v8, %v367_v25 }
  0xa2   :  { %v280_v3 = vadd.f32 %v248_v54, %v1250_v7 }
  0xa3   :  { %v475_v47 = vadd.f32 %v443_v39, %v279_v37 }
  0xa4   :  { %996 = vset.pattern.permute.xlu1 %v1022_v6  ;;  %v307_v31 = vpop.permute.xlu1 %306 }
  0xa5   :  { %414 = vperm.xlu1 %996, %v1144_v30   ;;  %v428_v48 = vmul.f32 %v1253_v8, %v307_v31  ;;  %v507_v58 = vmax.f32 %v475_v47, 0.0 }
  0xa6   :  { %v295_v34 = vpop.permute.xlu0 %294 }
  0xa7   :  { %v425_v36 = vmul.f32 %v1253_v8, %v295_v34  ;;  %v460_v60 = vadd.f32 %v428_v48, %v264_v51 }
  0xa9   :  { %354 = vperm.xlu1 %996, %v27_v22   ;;  %v88_v40 = vpop.permute.xlu1 %87  ;;  %v457_v6 = vadd.f32 %v425_v36, %v261_v32  ;;  %v492_v10 = vmax.f32 %v460_v60, 0.0 }
  0xaa   :  { %v363_v30 = vpop.permute.xlu0 %362  ;;  %v233_v4 = vmul.f32 %v1246_v1, %v88_v40 }
  0xab   :  { %v442_v44 = vmul.f32 %v1253_v8, %v363_v30  ;;  %v489_v45 = vmax.f32 %v457_v6, 0.0 }
  0xac   :  { %v265_v18 = vadd.f32 %v233_v4, %v1250_v7 }
  0xad   :  { %v474_v49 = vadd.f32 %v442_v44, %v278_v42  ;;  %v93_v50 = vpop.permute.xlu1 %92  ;;  %878 = vmatprep.mubr.f32.mxu0 %v489_v45 }
  0xae   :  { %879 = vmatmul.mubr.f32.vlgmr.msra.gmra.mrb[0].mxu0 %v490_v46  ;;  %v303_v52 = vpop.permute.xlu0 %302  ;;  %v234_v14 = vmul.f32 %v1246_v1, %v93_v50 }
  0xaf   :  { %v506_v55 = vmax.f32 %v474_v49, 0.0  ;;  %v427_v56 = vmul.f32 %v1253_v8, %v303_v52  ;;  %v251_v49 = vmul.f32 %v1246_v1, %v1259_v17 }
  0xb0   :  { %v266_v2 = vadd.f32 %v234_v14, %v1250_v7 }
  0xb1   :  { %v459_v62 = vadd.f32 %v427_v56, %v263_v53  ;;  %v173_v63 = vpop.permute.xlu1 %172  ;;  %903 = vmatmul.mubr.f32.vlgmr.msra.gmra.mrb[0].mxu1 %v506_v55  ;;  %v283_v53 = vadd.f32 %v251_v49, %v1250_v7 }
  0xb2   :  { %905 = vmatprep.mubr.f32.mxu1 %v507_v58  ;;  %v371_v0 = vpop.permute.xlu0 %370  ;;  %v250_v13 = vmul.f32 %v1246_v1, %v173_v63 }
  0xb3   :  { %v491_v5 = vmax.f32 %v459_v62, 0.0  ;;  %v444_v9 = vmul.f32 %v1253_v8, %v371_v0 }
  0xb4   :  { %v282_v28 = vadd.f32 %v250_v13, %v1250_v7 }
  0xb5   :  { %v476_v12 = vadd.f32 %v444_v9, %v280_v3  ;;  %881 = vmatprep.mubr.f32.mxu0 %v491_v5 }
  0xb6   :  { %v375_v15 = vpop.permute.xlu1 %374  ;;  %882 = vmatmul.mubr.f32.gmra.mrb[2].mxu0 %v492_v10  ;;  %v311_v16 = vpop.permute.xlu0 %310 }
  0xb7   :  { %v508_v20 = vmax.f32 %v476_v12, 0.0  ;;  %v445_v22 = vmul.f32 %v1253_v8, %v375_v15  ;;  %v429_v23 = vmul.f32 %v1253_v8, %v311_v16 }
  0xb9   :  { %v477_v25 = vadd.f32 %v445_v22, %v281_v11  ;;  %v461_v26 = vadd.f32 %v429_v23, %v265_v18  ;;  %906 = vmatmul.mubr.f32.gmra.mrb[2].mxu1 %v508_v20  ;;  %v253_v18 = vmul.f32 %v1246_v1, %v1261_v19 }
  0xba   :  { %v315_v29 = vpop.permute.xlu1 %314  ;;  %v379_v31 = vpop.permute.xlu0 %378 }
  0xbb   :  { %v509_v32 = vmax.f32 %v477_v25, 0.0  ;;  %v493_v33 = vmax.f32 %v461_v26, 0.0  ;;  %v430_v34 = vmul.f32 %v1253_v8, %v315_v29  ;;  %v446_v35 = vmul.f32 %v1253_v8, %v379_v31 }
  0xbc   :  { %v285_v26 = vadd.f32 %v253_v18, %v1250_v7 }
  0xbd   :  { %v462_v36 = vadd.f32 %v430_v34, %v266_v2  ;;  %v478_v37 = vadd.f32 %v446_v35, %v282_v28  ;;  %884 = vmatprep.mubr.f32.mxu0 %v493_v33  ;;  %908 = vmatprep.mubr.f32.mxu1 %v509_v32 }
  0xbe   :  { %v319_v38 = vpop.permute.xlu0 %318 }
  0xbf   :  { %v494_v39 = vmax.f32 %v462_v36, 0.0  ;;  %v510_v40 = vmax.f32 %v478_v37, 0.0  ;;  %v98_v6 = vpop.permute.xlu1 %97  ;;  %v431_v30 = vmul.f32 %v1253_v8, %v319_v38 }
  0xc0   :  { %v235_v41 = vmul.f32 %v1246_v1, %v98_v6 }
  0xc1   :  { %885 = vmatmul.mubr.f32.gmra.mrb[4].mxu0 %v494_v39  ;;  %909 = vmatmul.mubr.f32.gmra.mrb[4].mxu1 %v510_v40 }
  0xc2   :  { %v267_v42 = vadd.f32 %v235_v41, %v1250_v7  ;;  %v387_v47 = vpop.permute.xlu0 %386 }
  0xc3   :  { %v103_v43 = vpop.permute.xlu1 %102  ;;  %v448_v51 = vmul.f32 %v1253_v8, %v387_v47 }
  0xc4   :  { %v463_v44 = vadd.f32 %v431_v30, %v267_v42  ;;  %v236_v54 = vmul.f32 %v1246_v1, %v103_v43 }
  0xc6   :  { %v495_v45 = vmax.f32 %v463_v44, 0.0  ;;  %v268_v61 = vadd.f32 %v236_v54, %v1250_v7  ;;  %v327_v4 = vpop.permute.xlu0 %326 }
  0xc7   :  { %v183_v46 = vpop.permute.xlu1 %182  ;;  %v433_v9 = vmul.f32 %v1253_v8, %v327_v4 }
  0xc8   :  { %v252_v48 = vmul.f32 %v1246_v1, %v183_v46  ;;  %887 = vmatprep.mubr.f32.mxu0 %v495_v45  ;;  %v255_v46 = vmul.f32 %v1246_v1, %v1264_v21 }
  0xca   :  { %v284_v50 = vadd.f32 %v252_v48, %v1250_v7  ;;  %v395_v20 = vpop.permute.xlu0 %394 }
  0xcb   :  { %v450_v22 = vmul.f32 %v1253_v8, %v395_v20 }
  0xcc   :  { %v383_v52 = vpop.permute.xlu1 %382  ;;  %v480_v56 = vadd.f32 %v448_v51, %v284_v50  ;;  %v287_v51 = vadd.f32 %v255_v46, %v1250_v7 }
  0xcd   :  { %v447_v55 = vmul.f32 %v1253_v8, %v383_v52 }
  0xce   :  { %v512_v17 = vmax.f32 %v480_v56, 0.0  ;;  %v335_v37 = vpop.permute.xlu0 %334 }
  0xcf   :  { %v479_v58 = vadd.f32 %v447_v55, %v283_v53  ;;  %v435_v40 = vmul.f32 %v1253_v8, %v335_v37 }
  0xd0   :  { %v323_v60 = vpop.permute.xlu1 %322 }
  0xd1   :  { %v511_v62 = vmax.f32 %v479_v58, 0.0  ;;  %v432_v63 = vmul.f32 %v1253_v8, %v323_v60 }
  0xd2   :  { %v403_v48 = vpop.permute.xlu0 %402 }
  0xd3   :  { %v464_v0 = vadd.f32 %v432_v63, %v268_v61  ;;  %911 = vmatprep.mubr.f32.mxu1 %v511_v62  ;;  %v452_v49 = vmul.f32 %v1253_v8, %v403_v48 }
  0xd4   :  { %912 = vmatmul.mubr.f32.gmra.mrb[6].mxu1 %v512_v17 }
  0xd5   :  { %v496_v3 = vmax.f32 %v464_v0, 0.0  ;;  %v108_v5 = vpop.permute.xlu1 %107 }
  0xd6   :  { %v237_v10 = vmul.f32 %v1246_v1, %v108_v5 }
  0xd7   :  { %888 = vmatmul.mubr.f32.gmra.mrb[6].mxu0 %v496_v3  ;;  %v343_v3 = vpop.permute.xlu0 %342 }
  0xd8   :  { %v269_v11 = vadd.f32 %v237_v10, %v1250_v7  ;;  %v437_v4 = vmul.f32 %v1253_v8, %v343_v3 }
  0xd9   :  { %v113_v12 = vpop.permute.xlu1 %112 }
  0xda   :  { %v465_v14 = vadd.f32 %v433_v9, %v269_v11  ;;  %v238_v2 = vmul.f32 %v1246_v1, %v113_v12 }
  0xdc   :  { %v497_v13 = vmax.f32 %v465_v14, 0.0  ;;  %v270_v33 = vadd.f32 %v238_v2, %v1250_v7 }
  0xdd   :  { %v193_v15 = vpop.permute.xlu1 %192 }
  0xde   :  { %v254_v16 = vmul.f32 %v1246_v1, %v193_v15  ;;  %890 = vmatprep.mubr.f32.mxu0 %v497_v13  ;;  %v257_v13 = vmul.f32 %v1246_v1, %v1269_v24 }
  0xe0   :  { %v286_v23 = vadd.f32 %v254_v16, %v1250_v7  ;;  %v411_v16 = vpop.permute.xlu0 %410 }
  0xe1   :  { %v454_v18 = vmul.f32 %v1253_v8, %v411_v16 }
  0xe2   :  { %v391_v25 = vpop.permute.xlu1 %390  ;;  %v482_v29 = vadd.f32 %v450_v22, %v286_v23  ;;  %v289_v22 = vadd.f32 %v257_v13, %v1250_v7 }
  0xe3   :  { %v449_v28 = vmul.f32 %v1253_v8, %v391_v25 }
  0xe4   :  { %v514_v35 = vmax.f32 %v482_v29, 0.0 }
  0xe5   :  { %v481_v31 = vadd.f32 %v449_v28, %v285_v26 }
  0xe6   :  { %v331_v32 = vpop.permute.xlu1 %330 }
  0xe7   :  { %v513_v34 = vmax.f32 %v481_v31, 0.0  ;;  %v434_v19 = vmul.f32 %v1253_v8, %v331_v32 }
  0xe9   :  { %v466_v36 = vadd.f32 %v434_v19, %v270_v33  ;;  %914 = vmatprep.mubr.f32.mxu1 %v513_v34 }
  0xea   :  { %915 = vmatmul.mubr.f32.gmra.mrb[8].mxu1 %v514_v35 }
  0xeb   :  { %v498_v38 = vmax.f32 %v466_v36, 0.0  ;;  %v118_v39 = vpop.permute.xlu1 %117  ;;  %v351_v36 = vpop.permute.xlu0 %350 }
  0xec   :  { %v239_v6 = vmul.f32 %v1246_v1, %v118_v39  ;;  %v439_v37 = vmul.f32 %v1253_v8, %v351_v36 }
  0xed   :  { %891 = vmatmul.mubr.f32.gmra.mrb[8].mxu0 %v498_v38 }
  0xee   :  { %v271_v41 = vadd.f32 %v239_v6, %v1250_v7 }
  0xef   :  { %v123_v30 = vpop.permute.xlu1 %122 }
  0xf0   :  { %v467_v42 = vadd.f32 %v435_v40, %v271_v41  ;;  %v240_v52 = vmul.f32 %v1246_v1, %v123_v30 }
  0xf2   :  { %v499_v43 = vmax.f32 %v467_v42, 0.0  ;;  %v272_v58 = vadd.f32 %v240_v52, %v1250_v7  ;;  %v259_v42 = vmul.f32 %v1246_v1, %v1272_v27 }
  0xf3   :  { %v203_v44 = vpop.permute.xlu1 %202 }
  0xf4   :  { %v256_v45 = vmul.f32 %v1246_v1, %v203_v44  ;;  %893 = vmatprep.mubr.f32.mxu0 %v499_v43  ;;  %v419_v43 = vpop.permute.xlu0 %418 }
  0xf6   :  { %v288_v47 = vadd.f32 %v256_v45, %v1250_v7  ;;  %v456_v45 = vmul.f32 %v1253_v8, %v419_v43 }
  0xf8   :  { %v399_v50 = vpop.permute.xlu1 %398  ;;  %v484_v54 = vadd.f32 %v452_v49, %v288_v47  ;;  %v291_v47 = vadd.f32 %v259_v42, %v1250_v7 }
  0xf9   :  { %v451_v53 = vmul.f32 %v1253_v8, %v399_v50 }
  0xfa   :  { %v516_v61 = vmax.f32 %v484_v54, 0.0 }
  0xfb   :  { %v483_v55 = vadd.f32 %v451_v53, %v287_v51 }
  0xfc   :  { %v339_v56 = vpop.permute.xlu1 %338 }
  0xfd   :  { %v515_v60 = vmax.f32 %v483_v55, 0.0  ;;  %v436_v21 = vmul.f32 %v1253_v8, %v339_v56 }
  0xff   :  { %v468_v62 = vadd.f32 %v436_v21, %v272_v58  ;;  %917 = vmatprep.mubr.f32.mxu1 %v515_v60  ;;  %v523_v60 = vsub.s32 3, %v1231_v57 }
 0x100   :  { %918 = vmatmul.mubr.f32.gmra.mrb[10].mxu1 %v516_v61 }
 0x101   :  { %v500_v63 = vmax.f32 %v468_v62, 0.0  ;;  %v128_v17 = vpop.permute.xlu1 %127 }
 0x102   :  { %v241_v0 = vmul.f32 %v1246_v1, %v128_v17 }
 0x103   :  { %894 = vmatmul.mubr.f32.gmra.mrb[10].mxu0 %v500_v63 }
 0x104   :  { %v273_v5 = vadd.f32 %v241_v0, %v1250_v7 }
 0x105   :  { %v133_v9 = vpop.permute.xlu1 %132 }
 0x106   :  { %v469_v10 = vadd.f32 %v437_v4, %v273_v5  ;;  %v242_v23 = vmul.f32 %v1246_v1, %v133_v9 }
 0x108   :  { %v501_v11 = vmax.f32 %v469_v10, 0.0  ;;  %v274_v29 = vadd.f32 %v242_v23, %v1250_v7 }
 0x109   :  { %v213_v12 = vpop.permute.xlu1 %212 }
 0x10a   :  { %v258_v14 = vmul.f32 %v1246_v1, %v213_v12  ;;  %896 = vmatprep.mubr.f32.mxu0 %v501_v11 }
 0x10c   :  { %v290_v15 = vadd.f32 %v258_v14, %v1250_v7 }
 0x10e   :  { %v407_v20 = vpop.permute.xlu1 %406  ;;  %v486_v26 = vadd.f32 %v454_v18, %v290_v15 }
 0x10f   :  { %v453_v25 = vmul.f32 %v1253_v8, %v407_v20 }
 0x110   :  { %v518_v32 = vmax.f32 %v486_v26, 0.0 }
 0x111   :  { %v485_v2 = vadd.f32 %v453_v25, %v289_v22 }
 0x112   :  { %v347_v28 = vpop.permute.xlu1 %346 }
 0x113   :  { %v517_v31 = vmax.f32 %v485_v2, 0.0  ;;  %v438_v24 = vmul.f32 %v1253_v8, %v347_v28 }
 0x115   :  { %v470_v33 = vadd.f32 %v438_v24, %v274_v29  ;;  %920 = vmatprep.mubr.f32.mxu1 %v517_v31 }
 0x116   :  { %921 = vmatmul.mubr.f32.gmra.mrb[12].mxu1 %v518_v32 }
 0x117   :  { %v502_v34 = vmax.f32 %v470_v33, 0.0  ;;  %v138_v19 = vpop.permute.xlu1 %137 }
 0x118   :  { %v243_v35 = vmul.f32 %v1246_v1, %v138_v19 }
 0x119   :  { %897 = vmatmul.mubr.f32.gmra.mrb[12].mxu0 %v502_v34 }
 0x11a   :  { %v275_v38 = vadd.f32 %v243_v35, %v1250_v7 }
 0x11b   :  { %v143_v39 = vpop.permute.xlu1 %142 }
 0x11c   :  { %v471_v40 = vadd.f32 %v439_v37, %v275_v38  ;;  %v244_v48 = vmul.f32 %v1246_v1, %v143_v39 }
 0x11e   :  { %v503_v6 = vmax.f32 %v471_v40, 0.0  ;;  %v276_v53 = vadd.f32 %v244_v48, %v1250_v7 }
 0x11f   :  { %v223_v41 = vpop.permute.xlu1 %222 }
 0x120   :  { %v260_v30 = vmul.f32 %v1246_v1, %v223_v41  ;;  %899 = vmatprep.mubr.f32.mxu0 %v503_v6  ;;  %v1375_v1 = vrot.slane %v1238_v59, %v523_v60 }
 0x122   :  { %v292_v44 = vadd.f32 %v260_v30, %v1250_v7 }
 0x124   :  { %v415_v46 = vpop.permute.xlu1 %414  ;;  %v488_v50 = vadd.f32 %v456_v45, %v292_v44 }
 0x125   :  { %v455_v49 = vmul.f32 %v1253_v8, %v415_v46 }
 0x126   :  { %v520_v55 = vmax.f32 %v488_v50, 0.0 }
 0x127   :  { %v487_v51 = vadd.f32 %v455_v49, %v291_v47 }
 0x128   :  { %v355_v52 = vpop.permute.xlu1 %354 }
 0x129   :  { %v519_v54 = vmax.f32 %v487_v51, 0.0  ;;  %v440_v27 = vmul.f32 %v1253_v8, %v355_v52 }
 0x12b   :  { %v472_v56 = vadd.f32 %v440_v27, %v276_v53  ;;  %923 = vmatprep.mubr.f32.mxu1 %v519_v54 }
 0x12c   :  { %924 = vmatmul.mubr.f32.gmra.mrb[14].mxu1 %v520_v55 }
 0x12d   :  { %v504_v58 = vmax.f32 %v472_v56, 0.0 }
 0x12f   :  { %900 = vmatmul.mubr.f32.gmra.mrb[14].mxu0 %v504_v58 }
 0x181   :  { %v880_v21 = vpop.f32.mrb[0].mxu0 }
 0x182   :  { %v597_v61 = vadd.f32 %v880_v21, %v1375_v1  ;;  %v591_v62 = vpop.f32.mrb[1].mxu0 }
 0x183   :  { %v592_v7 = vadd.f32 %v591_v62, %v1375_v1 }
 0x184   :  { %751 = vst [vmem:[#allocation2 + $0x8] sm:$0xff] %v597_v61  ;;  %v904_v63 = vpop.f32.mrb[0].mxu1 }
 0x185   :  { %750 = vst [vmem:[#allocation2] sm:$0xff] %v592_v7  ;;  %v677_v8 = vadd.f32 %v904_v63, %v1375_v1  ;;  %v671_v17 = vpop.f32.mrb[1].mxu1 }
 0x186   :  { %v672_v0 = vadd.f32 %v671_v17, %v1375_v1 }
 0x187   :  { %767 = vst [vmem:[#allocation2 + $0x88] sm:$0xff] %v677_v8 }
 0x188   :  { %766 = vst [vmem:[#allocation2 + $0x80] sm:$0xff] %v672_v0 }
 0x189   :  { %v883_v57 = vpop.f32.mrb[2].mxu0 }
 0x18a   :  { %v607_v59 = vadd.f32 %v883_v57, %v1375_v1  ;;  %v601_v3 = vpop.f32.mrb[3].mxu0 }
 0x18b   :  { %v602_v4 = vadd.f32 %v601_v3, %v1375_v1 }
 0x18c   :  { %753 = vst [vmem:[#allocation2 + $0x18] sm:$0xff] %v607_v59  ;;  %v907_v5 = vpop.f32.mrb[2].mxu1 }
 0x18d   :  { %752 = vst [vmem:[#allocation2 + $0x10] sm:$0xff] %v602_v4  ;;  %v687_v9 = vadd.f32 %v907_v5, %v1375_v1  ;;  %v681_v10 = vpop.f32.mrb[3].mxu1 }
 0x18e   :  { %v682_v11 = vadd.f32 %v681_v10, %v1375_v1 }
 0x18f   :  { %769 = vst [vmem:[#allocation2 + $0x98] sm:$0xff] %v687_v9 }
 0x190   :  { %768 = vst [vmem:[#allocation2 + $0x90] sm:$0xff] %v682_v11 }
 0x194   :  { %v886_v12 = vpop.f32.mrb[4].mxu0  ;;  %v910_v14 = vpop.f32.mrb[4].mxu1 }
 0x195   :  { %v617_v13 = vadd.f32 %v886_v12, %v1375_v1  ;;  %v697_v15 = vadd.f32 %v910_v14, %v1375_v1  ;;  %v611_v16 = vpop.f32.mrb[5].mxu0  ;;  %v691_v18 = vpop.f32.mrb[5].mxu1 }
 0x196   :  { %v612_v20 = vadd.f32 %v611_v16, %v1375_v1  ;;  %v692_v22 = vadd.f32 %v691_v18, %v1375_v1 }
 0x197   :  { %755 = vst [vmem:[#allocation2 + $0x28] sm:$0xff] %v617_v13  ;;  %771 = vst [vmem:[#allocation2 + $0xa8] sm:$0xff] %v697_v15 }
 0x198   :  { %754 = vst [vmem:[#allocation2 + $0x20] sm:$0xff] %v612_v20  ;;  %770 = vst [vmem:[#allocation2 + $0xa0] sm:$0xff] %v692_v22 }
 0x1a7   :  { %v913_v23 = vpop.f32.mrb[6].mxu1 }
 0x1a8   :  { %v707_v25 = vadd.f32 %v913_v23, %v1375_v1  ;;  %v701_v26 = vpop.f32.mrb[7].mxu1 }
 0x1a9   :  { %v702_v2 = vadd.f32 %v701_v26, %v1375_v1 }
 0x1aa   :  { %773 = vst [vmem:[#allocation2 + $0xb8] sm:$0xff] %v707_v25  ;;  %v889_v28 = vpop.f32.mrb[6].mxu0 }
 0x1ab   :  { %772 = vst [vmem:[#allocation2 + $0xb0] sm:$0xff] %v702_v2  ;;  %v627_v29 = vadd.f32 %v889_v28, %v1375_v1  ;;  %v621_v31 = vpop.f32.mrb[7].mxu0 }
 0x1ac   :  { %v622_v24 = vadd.f32 %v621_v31, %v1375_v1 }
 0x1ad   :  { %757 = vst [vmem:[#allocation2 + $0x38] sm:$0xff] %v627_v29 }
 0x1ae   :  { %756 = vst [vmem:[#allocation2 + $0x30] sm:$0xff] %v622_v24 }
 0x1bd   :  { %v916_v32 = vpop.f32.mrb[8].mxu1 }
 0x1be   :  { %v717_v33 = vadd.f32 %v916_v32, %v1375_v1  ;;  %v711_v34 = vpop.f32.mrb[9].mxu1 }
 0x1bf   :  { %v712_v19 = vadd.f32 %v711_v34, %v1375_v1 }
 0x1c0   :  { %775 = vst [vmem:[#allocation2 + $0xc8] sm:$0xff] %v717_v33  ;;  %v892_v35 = vpop.f32.mrb[8].mxu0 }
 0x1c1   :  { %774 = vst [vmem:[#allocation2 + $0xc0] sm:$0xff] %v712_v19  ;;  %v637_v36 = vadd.f32 %v892_v35, %v1375_v1  ;;  %v631_v37 = vpop.f32.mrb[9].mxu0 }
 0x1c2   :  { %v632_v38 = vadd.f32 %v631_v37, %v1375_v1 }
 0x1c3   :  { %759 = vst [vmem:[#allocation2 + $0x48] sm:$0xff] %v637_v36 }
 0x1c4   :  { %758 = vst [vmem:[#allocation2 + $0x40] sm:$0xff] %v632_v38 }
 0x1d3   :  { %v919_v39 = vpop.f32.mrb[10].mxu1 }
 0x1d4   :  { %v727_v40 = vadd.f32 %v919_v39, %v1375_v1  ;;  %v721_v6 = vpop.f32.mrb[11].mxu1 }
 0x1d5   :  { %v722_v41 = vadd.f32 %v721_v6, %v1375_v1 }
 0x1d6   :  { %777 = vst [vmem:[#allocation2 + $0xd8] sm:$0xff] %v727_v40  ;;  %v895_v30 = vpop.f32.mrb[10].mxu0 }
 0x1d7   :  { %776 = vst [vmem:[#allocation2 + $0xd0] sm:$0xff] %v722_v41  ;;  %v647_v42 = vadd.f32 %v895_v30, %v1375_v1  ;;  %v641_v43 = vpop.f32.mrb[11].mxu0 }
 0x1d8   :  { %v642_v44 = vadd.f32 %v641_v43, %v1375_v1 }
 0x1d9   :  { %761 = vst [vmem:[#allocation2 + $0x58] sm:$0xff] %v647_v42 }
 0x1da   :  { %760 = vst [vmem:[#allocation2 + $0x50] sm:$0xff] %v642_v44 }
 0x1e9   :  { %v922_v45 = vpop.f32.mrb[12].mxu1 }
 0x1ea   :  { %v737_v46 = vadd.f32 %v922_v45, %v1375_v1  ;;  %v731_v47 = vpop.f32.mrb[13].mxu1 }
 0x1eb   :  { %v732_v48 = vadd.f32 %v731_v47, %v1375_v1 }
 0x1ec   :  { %779 = vst [vmem:[#allocation2 + $0xe8] sm:$0xff] %v737_v46  ;;  %v898_v49 = vpop.f32.mrb[12].mxu0 }
 0x1ed   :  { %778 = vst [vmem:[#allocation2 + $0xe0] sm:$0xff] %v732_v48  ;;  %v657_v50 = vadd.f32 %v898_v49, %v1375_v1  ;;  %v651_v51 = vpop.f32.mrb[13].mxu0 }
 0x1ee   :  { %v652_v52 = vadd.f32 %v651_v51, %v1375_v1 }
 0x1ef   :  { %763 = vst [vmem:[#allocation2 + $0x68] sm:$0xff] %v657_v50 }
 0x1f0   :  { %762 = vst [vmem:[#allocation2 + $0x60] sm:$0xff] %v652_v52 }
 0x1ff   :  { %v925_v53 = vpop.f32.mrb[14].mxu1 }
 0x200   :  { %v747_v54 = vadd.f32 %v925_v53, %v1375_v1  ;;  %v741_v27 = vpop.f32.mrb[15].mxu1 }
 0x201   :  { %v742_v55 = vadd.f32 %v741_v27, %v1375_v1 }
 0x202   :  { %781 = vst [vmem:[#allocation2 + $0xf8] sm:$0xff] %v747_v54  ;;  %v901_v56 = vpop.f32.mrb[14].mxu0 }
 0x203   :  { %780 = vst [vmem:[#allocation2 + $0xf0] sm:$0xff] %v742_v55  ;;  %v667_v58 = vadd.f32 %v901_v56, %v1375_v1  ;;  %v661_v60 = vpop.f32.mrb[15].mxu0 }
 0x204   :  { %v662_v21 = vadd.f32 %v661_v60, %v1375_v1 }
 0x205   :  { %765 = vst [vmem:[#allocation2 + $0x78] sm:$0xff] %v667_v58 }
 0x206   :  { %764 = vst [vmem:[#allocation2 + $0x70] sm:$0xff] %v662_v21 }
 0x207   :  { %1008 = shalt.err (!%p1005_p4)
}
 0x208   :  { %s1009_s26 = scalar_lea.hbm %s1423_s2, 4096 }
 0x209   :  { %p1010_p5 = scmp.ne.s32.totalorder %s1423_s2, %s1009_s26  ;;  %p1013_p6 = scmp.lt.u32.totalorder %s1009_s26, %s1423_s2 }
 0x20b   :  { %p1015_p7 = pnand %p1013_p6, %p1010_p5 }
 0x20d   :  { %1018 = shalt.err (!%p1015_p7)
}
 0x20e   :  { %s1024_s3 = smov 128   ;;  %s1025_s4 = smov 8  }
 0x20f   :  { %793 = dma.vmem_to_hbm [thread:$0]  %s788_s22, 4096, %s1423_s2, [#allocation3], %s1024_s3, %s1024_s3, %s1025_s4  }
 0x210   :  { %1019 = dma.done.wait [#allocation3], 4096  }
 0x211   :  { %1020 = vsyncadd [#allocation3], 4294963200 }
 0x212   :  { %797 = vsyncpa [#allocation3], 1 }

</bundles_post_ra>
